<compile_context>
chip_gen: v5e
topology: v5e:2x2
jax: 0.10.0
libtpu: 0.0.40
codegen_flags: <defaults>
</compile_context>

<pallas_src>
import jax
import jax.numpy as jnp
from jax.experimental import pallas as pl
from jax.experimental.pallas import tpu as pltpu

IN_FEATURES = 768
OUT_FEATURES = 1
MAX_TB = 2048      # batch tile rows (multiple of 8); 2*TB*3KiB = 12 MiB dbl-buffered


def _round_up(x, m):
    return (x + m - 1) // m * m


def _regressor_kernel(x_ref, w_ref, b_ref, o_ref):
    # x_ref: (TB, 768) VMEM, w_ref: (1, 768) VMEM, b_ref: (1, 1) SMEM scalar,
    # o_ref: (TB, 1) VMEM.
    #
    # VPU elementwise multiply (sublane-broadcast of w) + cross-lane reduce.
    # No MXU: N=1 makes a padded matmul 128x redundant and (on v5e/v7x) the
    # critical path; the VPU/XLU route hides entirely under the x DMA.
    prod = x_ref[...] * w_ref[...]                      # (TB, 768)
    acc = jnp.sum(prod, axis=-1, keepdims=True)         # (TB, 1) f32
    o_ref[...] = (acc + b_ref[0, 0]).astype(o_ref.dtype)


def commonlit_regression_forward(x, weight, bias, *, max_tb=MAX_TB):
    """x: (B, 768) f32, weight: (1, 768) f32, bias: (1,) f32 -> (B, 1) f32."""
    B, F = x.shape
    assert F == IN_FEATURES
    assert weight.shape == (OUT_FEATURES, IN_FEATURES)
    assert bias.shape == (OUT_FEATURES,)

    # Batch tile: multiple of 8, capped so double-buffered x tiles stay well
    # under the scoped VMEM limit on every generation (incl. v7x).
    tb = min(max_tb, _round_up(B, 8))
    nb = pl.cdiv(B, tb)   # ragged boundary block handled by partial DMAs

    b_smem = bias.reshape(1, 1)

    itemsize = jnp.dtype(x.dtype).itemsize
    cost = pl.CostEstimate(
        flops=2 * B * IN_FEATURES,
        transcendentals=0,
        bytes_accessed=(B * IN_FEATURES + IN_FEATURES + B) * itemsize,
    )

    out = pl.pallas_call(
        _regressor_kernel,
        out_shape=jax.ShapeDtypeStruct((B, OUT_FEATURES), x.dtype),
        grid_spec=pltpu.PrefetchScalarGridSpec(
            num_scalar_prefetch=0,
            grid=(nb,),
            in_specs=[
                pl.BlockSpec((tb, IN_FEATURES), lambda i: (i, 0)),
                pl.BlockSpec((OUT_FEATURES, IN_FEATURES), lambda i: (0, 0)),
                pl.BlockSpec(memory_space=pltpu.MemorySpace.SMEM),
            ],
            out_specs=pl.BlockSpec((tb, OUT_FEATURES), lambda i: (i, 0)),
        ),
        compiler_params=pltpu.CompilerParams(
            dimension_semantics=("parallel",),
        ),
        cost_estimate=cost,
    )(x, weight, b_smem)

    return out


def _reference_forward(x, weight, bias):
    # Pure-JAX reference (eval-mode dropout = identity).
    return x @ weight.T + bias


if __name__ == "__main__":
    key = jax.random.PRNGKey(0)
    k_x, k_w, k_b = jax.random.split(key, 3)

    # Deterministic nn.Linear-style init: uniform(-1/sqrt(fan_in), 1/sqrt(fan_in)).
    bound = 1.0 / (IN_FEATURES ** 0.5)
    weight = jax.random.uniform(
        k_w, (OUT_FEATURES, IN_FEATURES), dtype=jnp.float32,
        minval=-bound, maxval=bound,
    )
    bias = jax.random.uniform(
        k_b, (OUT_FEATURES,), dtype=jnp.float32, minval=-bound, maxval=bound,
    )

    # Small-batch check (single tile).
    B = 8
    x = jax.random.normal(k_x, (B, IN_FEATURES), dtype=jnp.float32)
    out = jax.block_until_ready(commonlit_regression_forward(x, weight, bias))
    ref = _reference_forward(x, weight, bias)
    assert out.shape == (B, OUT_FEATURES)
    assert jnp.allclose(out, ref, atol=1e-5, rtol=1e-5), (out, ref)

    # Ragged multi-tile check: tb=16, B=24 -> grid of 2 with a partial
    # boundary block (exercises the no-pad ragged path).
    B2 = 24
    x2 = jax.random.normal(k_x, (B2, IN_FEATURES), dtype=jnp.float32)
    out2 = jax.block_until_ready(
        commonlit_regression_forward(x2, weight, bias, max_tb=16))
    ref2 = _reference_forward(x2, weight, bias)
    assert out2.shape == (B2, OUT_FEATURES)
    assert jnp.allclose(out2, ref2, atol=1e-5, rtol=1e-5)

    print("KERNEL_OK")
</pallas_src>

<mosaic_0001>
module attributes {stable_mosaic.version = 11 : i64} {
  func.func @_regressor_kernel(%arg0: i32, %arg1: memref<8x768xf32, #tpu.memory_space<vmem>>, %arg2: memref<1x768xf32, #tpu.memory_space<vmem>>, %arg3: memref<1x1xf32, #tpu.memory_space<smem>>, %arg4: memref<8x1xf32, #tpu.memory_space<vmem>>) attributes {dimension_semantics = [#tpu.dimension_semantics<parallel>], iteration_bounds = array<i64: 1>, scalar_prefetch = 0 : i64, scratch_operands = 0 : i64, tpu.core_type = #tpu.core_type<tc>, window_params = [{transform_indices = @transform_0, window_bounds = array<i64: 8, 768>}, {pipeline_mode = #tpu.pipeline_mode<synchronous>, transform_indices = @transform_1, window_bounds = array<i64: 1, 768>}, {transform_indices = @transform_2, window_bounds = array<i64: 1, 1>}, {transform_indices = @transform_3, window_bounds = array<i64: 8, 1>}]} {
    %c0 = arith.constant 0 : index
    %c0_0 = arith.constant 0 : index
    %0 = vector.load %arg1[%c0, %c0_0] : memref<8x768xf32, #tpu.memory_space<vmem>>, vector<8x768xf32>
    %c0_1 = arith.constant 0 : index
    %c0_2 = arith.constant 0 : index
    %1 = vector.load %arg2[%c0_1, %c0_2] : memref<1x768xf32, #tpu.memory_space<vmem>>, vector<1x768xf32>
    %2 = vector.broadcast %1 : vector<1x768xf32> to vector<8x768xf32>
    %3 = arith.mulf %0, %2 : vector<8x768xf32>
    %cst = arith.constant dense<0.000000e+00> : vector<8xf32>
    %4 = vector.multi_reduction <add>, %3, %cst [1] : vector<8x768xf32> to vector<8xf32>
    %5 = vector.shape_cast %4 : vector<8xf32> to vector<8x1xf32>
    %c0_3 = arith.constant 0 : index
    %c0_4 = arith.constant 0 : index
    %6 = memref.load %arg3[%c0_3, %c0_4] : memref<1x1xf32, #tpu.memory_space<smem>>
    %7 = vector.broadcast %6 : f32 to vector<8x1xf32>
    %8 = arith.addf %5, %7 : vector<8x1xf32>
    %c0_5 = arith.constant 0 : index
    %c0_6 = arith.constant 0 : index
    %9 = vector.load %arg4[%c0_5, %c0_6] : memref<8x1xf32, #tpu.memory_space<vmem>>, vector<8x1xf32>
    tpu.vector_store %arg4[%c0_5, %c0_6], %8 {strides = array<i32>} : memref<8x1xf32, #tpu.memory_space<vmem>>, vector<8x1xf32>,
    return
  }
  func.func @transform_0(%arg0: i32) -> (i32, i32) {
    %c0_i32 = arith.constant 0 : i32
    %c0_i32_0 = arith.constant 0 : i32
    return %arg0, %c0_i32 : i32, i32
  }
  func.func @transform_1(%arg0: i32) -> (i32, i32) {
    %c0_i32 = arith.constant 0 : i32
    %c0_i32_0 = arith.constant 0 : i32
    %c0_i32_1 = arith.constant 0 : i32
    return %c0_i32, %c0_i32_0 : i32, i32
  }
  func.func @transform_2(%arg0: i32) -> (i32, i32) {
    %c0_i32 = arith.constant 0 : i32
    %c0_i32_0 = arith.constant 0 : i32
    %c0_i32_1 = arith.constant 0 : i32
    return %c0_i32, %c0_i32_0 : i32, i32
  }
  func.func @transform_3(%arg0: i32) -> (i32, i32) {
    %c0_i32 = arith.constant 0 : i32
    %c0_i32_0 = arith.constant 0 : i32
    return %arg0, %c0_i32 : i32, i32
  }
}

</mosaic_0001>

<bundles_post_ra>
// kernel: tpu_custom_call.1
= control target key start
LH: loop header
LB: loop body
LE: loop exit
PB: predicated region body
PF: predicated region fallthrough
CT: control target
= control target key end

     0   :  { %9 = vsyncpa [#allocation4], 0  ;;  %s175_s0 = inlined_call_operand.hbm [shape: f32[8,768], index: 0, kind: input, shape index: {}]   ;;  %s176_s1 = inlined_call_operand.hbm [shape: f32[1,768], index: 1, kind: input, shape index: {}]   ;;  %s177_s2 = inlined_call_operand.<no memory space> [shape: f32[1,1], index: 2, kind: input, shape index: {}]   ;;  %s178_s3 = inlined_call_operand.vmem [shape: f32[8,1], index: 3, kind: output, shape index: {}]  }
   0x1   :  { %s16_s14 = sshll.u32 %s175_s0, 4  ;;  %s17_s14 = int_to_ptr.hbm [resolvable:$true] %s16_s14 }
   0x2   :  { %10 = vsyncpa [#allocation6], 0  ;;  %s141_s15 = smov [#allocation3]   ;;  %s27_s19 = sshll.u32 %s176_s1, 4  ;;  %s28_s19 = int_to_ptr.hbm [resolvable:$true] %s27_s19 }
   0x3   :  { %s18_s16 = sshll.u32 %s141_s15, 4  ;;  %s142_s20 = smov [#allocation5]   ;;  %s19_s16 = int_to_ptr.vmem [resolvable:$true] %s18_s16 }
   0x4   :  { %21 = dma.hbm_to_vmem [thread:$0]  %s17_s14, 768, %s19_s16, [#allocation4]  }
   0x5   :  { %s29_s21 = sshll.u32 %s142_s20, 4  ;;  %s30_s21 = int_to_ptr.vmem [resolvable:$true] %s29_s21 }
   0x6   :  { %32 = dma.hbm_to_vmem [thread:$0]  %s28_s19, 96, %s30_s21, [#allocation6]  }
   0x7   :  { %137 = dma.done.wait [#allocation4], 768  }
   0x8   :  { %138 = vsyncadd [#allocation4], 4294966528 }
   0x9   :  { %139 = dma.done.wait [#allocation6], 96  }
   0xa   :  { %140 = vsyncadd [#allocation6], 4294967200  ;;  %v43_v0 = vld [vmem:[#allocation3] sm:$0xff]  ;;  %v44_v1 = vld [vmem:[#allocation3 + $0x8] sm:$0xff]  ;;  %v77_v24 = vstv %s177_s2  ;;  %vm79_vm0 = vcmask 7168  }
   0xb   :  { %v45_v2 = vld [vmem:[#allocation3 + $0x10] sm:$0xff]  ;;  %v46_v8 = vld [vmem:[#allocation3 + $0x18] sm:$0xff]  ;;  %v47_v13 = vld [vmem:[#allocation3 + $0x20] sm:$0xff] }
   0xc   :  { %v49_v3 = vld [vmem:[#allocation5] sm:$0x3f]  ;;  %v48_v17 = vld [vmem:[#allocation3 + $0x28] sm:$0xff] }
   0xd   :  { %v51_v4 = vperm.slane %v49_v3, 0  ;;  %v52_v5 = vperm.slane %v49_v3, 1  ;;  %v53_v6 = vperm.slane %v49_v3, 2  ;;  %v54_v7 = vperm.slane %v49_v3, 3 }
   0xe   :  { %v55_v9 = vperm.slane %v49_v3, 4  ;;  %v56_v14 = vperm.slane %v49_v3, 5 }
   0xf   :  { %v63_v10 = vmul.f32 %v51_v4, %v43_v0  ;;  %v64_v11 = vmul.f32 %v52_v5, %v44_v1  ;;  %v65_v12 = vmul.f32 %v53_v6, %v45_v2  ;;  %v66_v15 = vmul.f32 %v54_v7, %v46_v8 }
  0x10   :  { %v67_v18 = vmul.f32 %v55_v9, %v47_v13  ;;  %v68_v20 = vmul.f32 %v56_v14, %v48_v17 }
  0x11   :  { %v69_v16 = vadd.f32 %v64_v11, %v63_v10 }
  0x13   :  { %v70_v19 = vadd.f32 %v69_v16, %v65_v12 }
  0x15   :  { %v71_v21 = vadd.f32 %v70_v19, %v66_v15 }
  0x17   :  { %v72_v22 = vadd.f32 %v71_v21, %v67_v18 }
  0x19   :  { %v73_v23 = vadd.f32 %v72_v22, %v68_v20 }
  0x1b   :  { %74 = vadd.xlane.f32.xlu0 %v73_v23 }
  0x8e   :  { %v75_v25 = vpop.xlane.xlu0 %74 }
  0x8f   :  { %v78_v26 = vadd.f32 %v77_v24, %v75_v25 }
  0x91   :  { %80 = vst.msk [vmem:[%s178_s3] sm:$0xff] %vm79_vm0, %v78_v26 }
  0x92   :  { %85 = vsyncpa [#allocation4], 1 }
  0x93   :  { %86 = vsyncpa [#allocation6], 1 }

</bundles_post_ra>
